<compile_context>
chip_gen: v7x
topology: tpu7x:2x2x1
jax: 0.10.0
libtpu: 0.0.40
codegen_flags: <defaults>
</compile_context>

<pallas_src>
import math

import jax
import jax.numpy as jnp
from jax.experimental import pallas as pl
from jax.experimental.pallas import tpu as pltpu


_OUT_SUB = 8          # output rows padded to one sublane group (3 real rows)
_SLAB_LANES = 128     # parameter slab lane width


def _round_up(x, m):
    return ((x + m - 1) // m) * m


def _activation(name):
    if name == "relu":
        return lambda x: jnp.maximum(x, 0.0)
    if name == "leaky_relu":
        return lambda x: jnp.where(x >= 0, x, 0.01 * x)
    if name == "elu":
        return lambda x: jnp.where(x > 0, x, jnp.exp(jnp.minimum(x, 0.0)) - 1.0)
    if name == "softplus":
        return lambda x: jnp.where(x > 20.0, x,
                                   jnp.log1p(jnp.exp(jnp.minimum(x, 20.0))))
    if name == "tanh":
        return jnp.tanh
    raise ValueError(f"unsupported activation: {name}")


# ----------------------------------------------------------------------------
# Parameter construction (deterministic, mirrors TransNet.define_network)
# ----------------------------------------------------------------------------
def init_transnet_params(cfg, key):
    input_t_dim = cfg["poseNet_freq"] * 2 + 1
    layers_list = cfg["layers_feat"]
    L = list(zip(layers_list[:-1], layers_list[1:]))
    params = []
    for li, (k_in, k_out) in enumerate(L):
        if li == 0:
            k_in = input_t_dim
        if li in cfg["skip"]:
            k_in += input_t_dim
        if li == len(L) - 1:
            k_out = 3
        key, wk = jax.random.split(key)
        if li == len(L) - 1:
            # torch.nn.init.uniform_(weight, b=1e-6) -> U(0, 1e-6)
            w = jax.random.uniform(wk, (k_in, k_out), jnp.float32, 0.0, 1e-6)
        else:
            # torch.nn.init.xavier_uniform_ (gain=1)
            bound = math.sqrt(6.0 / (k_in + k_out))
            w = jax.random.uniform(wk, (k_in, k_out), jnp.float32, -bound, bound)
        b = jnp.zeros((k_out,), jnp.float32)
        params.append((w, b))
    return params


# ----------------------------------------------------------------------------
# Parameter slab packing (transposed weights, static offsets)
# ----------------------------------------------------------------------------
def _pack_params(params, cfg):
    """Pack freq table, transposed weight chunks and biases into one
    zero-padded (R, 128) f32 slab.  Every chunk starts on an 8-row boundary.

    Returns (slab, freq_meta, layer_meta) with
      freq_meta  = (row_offset, rows)
      layer_meta = [( [(kind, off, rows, cols), ...], (bias_off, bias_rows) )]
      kind in {"feat", "idx", "sin", "cos"} describing which input block the
      weight-chunk columns multiply.
    """
    Lf = cfg["poseNet_freq"]
    skip = set(cfg["skip"])
    n_layers = len(params)

    blocks = []
    offset = 0

    def add(arr2d):
        nonlocal offset
        arr2d = jnp.asarray(arr2d, jnp.float32)
        r, c = arr2d.shape
        r_pad = _round_up(max(r, 1), 8)
        blk = jnp.zeros((r_pad, _SLAB_LANES), jnp.float32).at[:r, :c].set(arr2d)
        blocks.append(blk)
        off = offset
        offset += r_pad
        return off, r, c

    # Exact frequency table: 2^k * pi, k = 0..L-1 (bit-identical to reference).
    freq = (2.0 ** jnp.arange(Lf, dtype=jnp.float32)) * math.pi
    f_off, f_rows, _ = add(freq.reshape(Lf, 1))
    freq_meta = (f_off, f_rows)

    layer_meta = []
    for li, (w, b) in enumerate(params):
        w = jnp.asarray(w, jnp.float32)
        b = jnp.asarray(b, jnp.float32)
        assert w.shape[1] == b.shape[0]
        wt = w.T                                   # (C_out, C_in)
        c_out = wt.shape[0]
        last = li == n_layers - 1
        if last and c_out < _OUT_SUB:
            # Pad output rows with zero weights / zero bias; tanh(0) == 0, so
            # the pad rows of the stored (8, n_pad) output are exactly zero.
            wt = jnp.pad(wt, ((0, _OUT_SUB - c_out), (0, 0)))
            b = jnp.pad(b, (0, _OUT_SUB - c_out))

        # Column layout of the torch Linear input for this layer.
        kinds = []
        if li == 0:
            kinds += [("idx", 1), ("sin", Lf), ("cos", Lf)]
        else:
            kinds += [("feat", params[li - 1][0].shape[1])]
        if li in skip:
            kinds += [("idx", 1), ("sin", Lf), ("cos", Lf)]
        assert sum(width for _, width in kinds) == w.shape[0], (kinds, w.shape)

        w_meta = []
        col = 0
        for kind, width in kinds:
            off, r, c = add(wt[:, col:col + width])
            w_meta.append((kind, off, r, c))
            col += width
        b_off, b_rows, _ = add(b.reshape(-1, 1))
        layer_meta.append((w_meta, (b_off, b_rows)))

    slab = jnp.concatenate(blocks, axis=0)
    return slab, freq_meta, layer_meta


# ----------------------------------------------------------------------------
# Pallas kernel (transposed layout: features on sublanes, batch on lanes)
# ----------------------------------------------------------------------------
def _make_kernel(freq_meta, layer_meta, activ_name):
    activ = _activation(activ_name)
    n_layers = len(layer_meta)

    def kernel(idx_ref, slab_ref, out_ref):
        idx = idx_ref[...]                                        # (1, T)

        f_off, f_rows = freq_meta
        freq = slab_ref[pl.ds(f_off, f_rows), pl.ds(0, 1)]        # (L, 1)
        phase = freq * idx                                        # (L, T)
        s = jnp.sin(phase)                                        # sin block
        c = jnp.cos(phase)                                        # cos block

        feat = None
        for li, (w_meta, (b_off, b_rows)) in enumerate(layer_meta):
            z = None
            for kind, off, rows, cols in w_meta:
                w = slab_ref[pl.ds(off, rows), pl.ds(0, cols)]    # (C_out, cols)
                if kind == "feat":
                    term = jnp.dot(w, feat, preferred_element_type=jnp.float32)
                elif kind == "idx":
                    term = w * idx            # (C_out,1)*(1,T) rank-1 broadcast
                elif kind == "sin":
                    term = jnp.dot(w, s, preferred_element_type=jnp.float32)
                else:  # "cos"
                    term = jnp.dot(w, c, preferred_element_type=jnp.float32)
                z = term if z is None else z + term
            z = z + slab_ref[pl.ds(b_off, b_rows), pl.ds(0, 1)]   # bias (C_out,1)
            feat = jnp.tanh(z) if li == n_layers - 1 else activ(z)

        out_ref[...] = feat.astype(out_ref.dtype)                 # (8, T)

    return kernel


def transnet_forward(cfg, params, index, tile_n=4096, interpret=False):
    """Run TransNet.forward.  Returns (N, 3) float32."""
    idx = jnp.asarray(index).reshape(1, -1).astype(jnp.float32)   # (1, N)
    N = idx.shape[1]

    # Batch tile along the lane axis: multiple of 128, large enough to
    # amortise per-grid-step overhead, clamped for tiny batches.  For very
    # large N the grid has >= 2 steps so v7x megacore can shard it.
    tile = min(_round_up(max(tile_n, 128), 128), _round_up(N, 128))
    n_pad = _round_up(N, tile)
    if n_pad != N:
        idx = jnp.pad(idx, ((0, 0), (0, n_pad - N)))

    slab, freq_meta, layer_meta = _pack_params(params, cfg)
    kernel = _make_kernel(freq_meta, layer_meta, cfg["activ"])

    grid = (n_pad // tile,)
    out = pl.pallas_call(
        kernel,
        out_shape=jax.ShapeDtypeStruct((_OUT_SUB, n_pad), jnp.float32),
        grid=grid,
        in_specs=[
            pl.BlockSpec((1, tile), lambda i: (0, i)),        # indices
            pl.BlockSpec(slab.shape, lambda i: (0, 0)),       # packed params
        ],
        out_specs=pl.BlockSpec((_OUT_SUB, tile), lambda i: (0, i)),
        compiler_params=pltpu.CompilerParams(
            dimension_semantics=("parallel",),    # megacore-shardable on v7x
            vmem_limit_bytes=32 * 1024 * 1024,    # fits v7x's 64 MiB VMEM
        ),
        interpret=interpret,
    )(idx, slab)

    return out[:3, :N].T                                         # (N, 3)


# ----------------------------------------------------------------------------
# Pure-JAX reference (mirrors the PyTorch forward exactly, with torch.cat)
# ----------------------------------------------------------------------------
def transnet_reference(cfg, params, index):
    Lf = cfg["poseNet_freq"]
    idx = jnp.asarray(index).reshape(-1, 1).astype(jnp.float32)
    freq = (2.0 ** jnp.arange(Lf, dtype=jnp.float32)) * math.pi
    spectrum = idx[..., None] * freq                                   # (N,1,L)
    enc = jnp.stack([jnp.sin(spectrum), jnp.cos(spectrum)], axis=-2)   # (N,1,2,L)
    enc = enc.reshape(idx.shape[0], -1)                                # (N,2L)
    points_enc = jnp.concatenate([idx, enc], axis=-1)

    activ = _activation(cfg["activ"])
    feat = points_enc
    for li, (w, b) in enumerate(params):
        if li in cfg["skip"]:
            feat = jnp.concatenate([feat, points_enc], axis=-1)
        feat = feat @ w + b
        feat = jnp.tanh(feat) if li == len(params) - 1 else activ(feat)
    return feat


# ----------------------------------------------------------------------------
if __name__ == "__main__":
    cfg = {
        "poseNet_freq": 4,                # input_t_dim = 2*4 + 1 = 9
        "layers_feat": [16, 32, 32, 32],  # layers: 9->32, (32+9)->32, 32->3
        "skip": [1],
        "activ": "relu",
        "device": "tpu",
    }

    key = jax.random.PRNGKey(0)
    params = init_transnet_params(cfg, key)

    # Case 1: small batch of frame indices (typical use of the module).
    index = jnp.arange(8, dtype=jnp.int32)
    out = jax.block_until_ready(transnet_forward(cfg, params, index))
    ref = transnet_reference(cfg, params, index)
    assert out.shape == (8, 3) and out.dtype == jnp.float32
    assert jnp.allclose(out, ref, atol=1e-5, rtol=1e-5), (out, ref)

    # Case 2: non-multiple-of-tile batch -> exercises padding + multi-step grid.
    key, ik = jax.random.split(key)
    index2 = jax.random.randint(ik, (300,), 0, 32, dtype=jnp.int32)
    out2 = jax.block_until_ready(
        transnet_forward(cfg, params, index2, tile_n=128))
    ref2 = transnet_reference(cfg, params, index2)
    assert out2.shape == (300, 3)
    assert jnp.allclose(out2, ref2, atol=1e-5, rtol=1e-5)

    print("KERNEL_OK")
</pallas_src>

<mosaic_0001>
module attributes {stable_mosaic.version = 11 : i64} {
  func.func @kernel(%arg0: i32, %arg1: memref<1x128xf32, #tpu.memory_space<vmem>>, %arg2: memref<312x128xf32, #tpu.memory_space<vmem>>, %arg3: memref<8x128xf32, #tpu.memory_space<vmem>>) attributes {dimension_semantics = [#tpu.dimension_semantics<parallel>], iteration_bounds = array<i64: 1>, scalar_prefetch = 0 : i64, scratch_operands = 0 : i64, tpu.core_type = #tpu.core_type<tc>, window_params = [{transform_indices = @transform_0, window_bounds = array<i64: 1, 128>}, {pipeline_mode = #tpu.pipeline_mode<synchronous>, transform_indices = @transform_1, window_bounds = array<i64: 312, 128>}, {transform_indices = @transform_2, window_bounds = array<i64: 8, 128>}]} {
    %c0 = arith.constant 0 : index
    %c0_0 = arith.constant 0 : index
    %0 = vector.load %arg1[%c0, %c0_0] : memref<1x128xf32, #tpu.memory_space<vmem>>, vector<1x128xf32>
    %c0_1 = arith.constant 0 : index
    %c0_2 = arith.constant 0 : index
    %1 = vector.load %arg2[%c0_1, %c0_2] : memref<312x128xf32, #tpu.memory_space<vmem>>, vector<4x1xf32>
    %2 = vector.broadcast %1 : vector<4x1xf32> to vector<4x128xf32>
    %3 = vector.broadcast %0 : vector<1x128xf32> to vector<4x128xf32>
    %4 = arith.mulf %2, %3 : vector<4x128xf32>
    %5 = math.sin %4 : vector<4x128xf32>
    %6 = math.cos %4 : vector<4x128xf32>
    %c8 = arith.constant 8 : index
    %c0_3 = arith.constant 0 : index
    %7 = vector.load %arg2[%c8, %c0_3] : memref<312x128xf32, #tpu.memory_space<vmem>>, vector<32x1xf32>
    %8 = vector.broadcast %7 : vector<32x1xf32> to vector<32x128xf32>
    %9 = vector.broadcast %0 : vector<1x128xf32> to vector<32x128xf32>
    %10 = arith.mulf %8, %9 : vector<32x128xf32>
    %c40 = arith.constant 40 : index
    %c0_4 = arith.constant 0 : index
    %11 = vector.load %arg2[%c40, %c0_4] : memref<312x128xf32, #tpu.memory_space<vmem>>, vector<32x4xf32>
    %cst = arith.constant dense<0.000000e+00> : vector<32x128xf32>
    %12 = tpu.matmul %11, %5, %cst {dimension_numbers = #tpu.dot_dimension_numbers<[1], [0], [0], [1], [0, 0, 1, 1], [], []>} : vector<32x4xf32>, vector<4x128xf32>, vector<32x128xf32> -> vector<32x128xf32>
    %13 = arith.addf %10, %12 : vector<32x128xf32>
    %c72 = arith.constant 72 : index
    %c0_5 = arith.constant 0 : index
    %14 = vector.load %arg2[%c72, %c0_5] : memref<312x128xf32, #tpu.memory_space<vmem>>, vector<32x4xf32>
    %cst_6 = arith.constant dense<0.000000e+00> : vector<32x128xf32>
    %15 = tpu.matmul %14, %6, %cst_6 {dimension_numbers = #tpu.dot_dimension_numbers<[1], [0], [0], [1], [0, 0, 1, 1], [], []>} : vector<32x4xf32>, vector<4x128xf32>, vector<32x128xf32> -> vector<32x128xf32>
    %16 = arith.addf %13, %15 : vector<32x128xf32>
    %c104 = arith.constant 104 : index
    %c0_7 = arith.constant 0 : index
    %17 = vector.load %arg2[%c104, %c0_7] : memref<312x128xf32, #tpu.memory_space<vmem>>, vector<32x1xf32>
    %18 = vector.broadcast %17 : vector<32x1xf32> to vector<32x128xf32>
    %19 = arith.addf %16, %18 : vector<32x128xf32>
    %cst_8 = arith.constant 0.000000e+00 : f32
    %20 = vector.broadcast %cst_8 : f32 to vector<32x128xf32>
    %21 = arith.maximumf %19, %20 : vector<32x128xf32>
    %c136 = arith.constant 136 : index
    %c0_9 = arith.constant 0 : index
    %22 = vector.load %arg2[%c136, %c0_9] : memref<312x128xf32, #tpu.memory_space<vmem>>, vector<32x32xf32>
    %cst_10 = arith.constant dense<0.000000e+00> : vector<32x128xf32>
    %23 = tpu.matmul %22, %21, %cst_10 {dimension_numbers = #tpu.dot_dimension_numbers<[1], [0], [0], [1], [0, 0, 1, 1], [], []>} : vector<32x32xf32>, vector<32x128xf32>, vector<32x128xf32> -> vector<32x128xf32>
    %c168 = arith.constant 168 : index
    %c0_11 = arith.constant 0 : index
    %24 = vector.load %arg2[%c168, %c0_11] : memref<312x128xf32, #tpu.memory_space<vmem>>, vector<32x1xf32>
    %25 = vector.broadcast %24 : vector<32x1xf32> to vector<32x128xf32>
    %26 = vector.broadcast %0 : vector<1x128xf32> to vector<32x128xf32>
    %27 = arith.mulf %25, %26 : vector<32x128xf32>
    %28 = arith.addf %23, %27 : vector<32x128xf32>
    %c200 = arith.constant 200 : index
    %c0_12 = arith.constant 0 : index
    %29 = vector.load %arg2[%c200, %c0_12] : memref<312x128xf32, #tpu.memory_space<vmem>>, vector<32x4xf32>
    %cst_13 = arith.constant dense<0.000000e+00> : vector<32x128xf32>
    %30 = tpu.matmul %29, %5, %cst_13 {dimension_numbers = #tpu.dot_dimension_numbers<[1], [0], [0], [1], [0, 0, 1, 1], [], []>} : vector<32x4xf32>, vector<4x128xf32>, vector<32x128xf32> -> vector<32x128xf32>
    %31 = arith.addf %28, %30 : vector<32x128xf32>
    %c232 = arith.constant 232 : index
    %c0_14 = arith.constant 0 : index
    %32 = vector.load %arg2[%c232, %c0_14] : memref<312x128xf32, #tpu.memory_space<vmem>>, vector<32x4xf32>
    %cst_15 = arith.constant dense<0.000000e+00> : vector<32x128xf32>
    %33 = tpu.matmul %32, %6, %cst_15 {dimension_numbers = #tpu.dot_dimension_numbers<[1], [0], [0], [1], [0, 0, 1, 1], [], []>} : vector<32x4xf32>, vector<4x128xf32>, vector<32x128xf32> -> vector<32x128xf32>
    %34 = arith.addf %31, %33 : vector<32x128xf32>
    %c264 = arith.constant 264 : index
    %c0_16 = arith.constant 0 : index
    %35 = vector.load %arg2[%c264, %c0_16] : memref<312x128xf32, #tpu.memory_space<vmem>>, vector<32x1xf32>
    %36 = vector.broadcast %35 : vector<32x1xf32> to vector<32x128xf32>
    %37 = arith.addf %34, %36 : vector<32x128xf32>
    %cst_17 = arith.constant 0.000000e+00 : f32
    %38 = vector.broadcast %cst_17 : f32 to vector<32x128xf32>
    %39 = arith.maximumf %37, %38 : vector<32x128xf32>
    %c296 = arith.constant 296 : index
    %c0_18 = arith.constant 0 : index
    %40 = vector.load %arg2[%c296, %c0_18] : memref<312x128xf32, #tpu.memory_space<vmem>>, vector<8x32xf32>
    %cst_19 = arith.constant dense<0.000000e+00> : vector<8x128xf32>
    %41 = tpu.matmul %40, %39, %cst_19 {dimension_numbers = #tpu.dot_dimension_numbers<[1], [0], [0], [1], [0, 0, 1, 1], [], []>} : vector<8x32xf32>, vector<32x128xf32>, vector<8x128xf32> -> vector<8x128xf32>
    %c304 = arith.constant 304 : index
    %c0_20 = arith.constant 0 : index
    %42 = vector.load %arg2[%c304, %c0_20] : memref<312x128xf32, #tpu.memory_space<vmem>>, vector<8x1xf32>
    %43 = vector.broadcast %42 : vector<8x1xf32> to vector<8x128xf32>
    %44 = arith.addf %41, %43 : vector<8x128xf32>
    %45 = math.tanh %44 : vector<8x128xf32>
    %c0_21 = arith.constant 0 : index
    %c0_22 = arith.constant 0 : index
    %46 = vector.load %arg3[%c0_21, %c0_22] : memref<8x128xf32, #tpu.memory_space<vmem>>, vector<8x128xf32>
    tpu.vector_store %arg3[%c0_21, %c0_22], %45 {strides = array<i32>} : memref<8x128xf32, #tpu.memory_space<vmem>>, vector<8x128xf32>,
    return
  }
  func.func @transform_0(%arg0: i32) -> (i32, i32) {
    %c0_i32 = arith.constant 0 : i32
    %c0_i32_0 = arith.constant 0 : i32
    return %c0_i32, %arg0 : i32, i32
  }
  func.func @transform_1(%arg0: i32) -> (i32, i32) {
    %c0_i32 = arith.constant 0 : i32
    %c0_i32_0 = arith.constant 0 : i32
    %c0_i32_1 = arith.constant 0 : i32
    return %c0_i32, %c0_i32_0 : i32, i32
  }
  func.func @transform_2(%arg0: i32) -> (i32, i32) {
    %c0_i32 = arith.constant 0 : i32
    %c0_i32_0 = arith.constant 0 : i32
    return %c0_i32, %arg0 : i32, i32
  }
}

</mosaic_0001>

<bundles_post_ra>
// kernel: tpu_custom_call.1
= control target key start
LH: loop header
LB: loop body
LE: loop exit
PB: predicated region body
PF: predicated region fallthrough
CT: control target
= control target key end

     0   :  { %7 = vsyncpa [#allocation3], 0  ;;  %s1398_s0 = inlined_call_operand.hbm [shape: f32[1,128], index: 0, kind: input, shape index: {}]   ;;  %s1399_s1 = inlined_call_operand.hbm [shape: f32[312,128], index: 1, kind: input, shape index: {}]   ;;  %s1400_s2 = inlined_call_operand.hbm [shape: f32[8,128], index: 2, kind: output, shape index: {}]  }
   0x1   :  { %8 = vsyncpa [#allocation6], 0 }
   0x2   :  { %9 = vsyncpa [#allocation4], 0  ;;  %s1264_s9 = smov [#allocation2]   ;;  %s1265_s11 = smov [#allocation5]  }
   0x3   :  { %s16_s10 = sshll.u32 %s1264_s9, 4  ;;  %s25_s12 = sshll.u32 %s1265_s11, 4  ;;  %s17_s10 = int_to_ptr.vmem [resolvable:$true] %s16_s10  ;;  %s1294_s12 = int_to_ptr.vmem [resolvable:$true] %s25_s12 }
   0x4   :  { %s1192_s15 = scalar_lea.hbm %s1398_s0, 16 }
   0x5   :  { %p1193_p0 = scmp.ne.s32.totalorder %s1398_s0, %s1192_s15  ;;  %p1196_p1 = scmp.lt.u32.totalorder %s1192_s15, %s1398_s0 }
   0x7   :  { %p1198_p2 = pnand %p1196_p1, %p1193_p0 }
   0x9   :  { %1201 = shalt.err (!%p1198_p2)
}
   0xa   :  { %s1202_s20 = scalar_lea.vmem %s17_s10, 16  ;;  %s1206_s21 = scalar_lea.vmem %s17_s10, 32 }
   0xb   :  { %p1203_p3 = scmp.ne.s32.totalorder %s17_s10, %s1202_s20  ;;  %p1207_p4 = scmp.lt.s32.totalorder %s17_s10, %s17_s10 }
   0xc   :  { %p1208_p5 = scmp.lt.s32.totalorder %s1206_s21, %s1202_s20 }
   0xe   :  { %p1209_p6 = por %p1208_p5, %p1207_p4 }
  0x10   :  { %p1210_p7 = pnand %p1209_p6, %p1203_p3 }
  0x12   :  { %1213 = shalt.err (!%p1210_p7)
}
  0x13   :  { %19 = dma.hbm_to_vmem [thread:$0]  %s1398_s0, 16, %s17_s10, [#allocation3]  }
  0x14   :  { %s1214_s26 = scalar_lea.hbm %s1399_s1, 4992 }
  0x15   :  { %p1215_p8 = scmp.ne.s32.totalorder %s1399_s1, %s1214_s26  ;;  %p1218_p9 = scmp.lt.u32.totalorder %s1214_s26, %s1399_s1 }
  0x17   :  { %p1220_p10 = pnand %p1218_p9, %p1215_p8 }
  0x19   :  { %1223 = shalt.err (!%p1220_p10)
}
  0x1a   :  { %s1224_s3 = scalar_lea.vmem %s1294_s12, 4992  ;;  %p1229_p12 = scmp.lt.s32.totalorder %s1294_s12, %s1294_s12 }
  0x1b   :  { %p1225_p11 = scmp.ne.s32.totalorder %s1294_s12, %s1224_s3  ;;  %p1230_p13 = scmp.lt.s32.totalorder %s1224_s3, %s1224_s3 }
  0x1d   :  { %p1231_p0 = por %p1230_p13, %p1229_p12 }
  0x1f   :  { %p1232_p1 = pnand %p1231_p0, %p1225_p11 }
  0x21   :  { %1235 = shalt.err (!%p1232_p1)
}
  0x22   :  { %s1266_s0 = smov 128   ;;  %s1267_s4 = smov 8  }
  0x23   :  { %31 = dma.hbm_to_vmem [thread:$0]  %s1399_s1, 4992, %s1294_s12, [#allocation6], %s1266_s0, %s1266_s0, %s1267_s4  }
  0x24   :  { %1258 = dma.done.wait [#allocation3], 16  }
  0x25   :  { %1259 = vsyncadd [#allocation3], 4294967280 }
  0x26   :  { %1260 = dma.done.wait [#allocation6], 4992  }
  0x27   :  { %1261 = vsyncadd [#allocation6], 4294962304  ;;  %v1268_v0 = vmov 0   ;;  %v39_v1 = vld [vmem:[#allocation5] sm:$0xf]  ;;  %v259_v2 = vld [vmem:[#allocation5 + $0x8] sm:$0xff] }
  0x28   :  { %1184 = vset.pattern.permute.xlu0 %v1268_v0  ;;  %1185 = vset.pattern.permute.xlu1 %v1268_v0  ;;  %v262_v3 = vld [vmem:[#allocation5 + $0x20] sm:$0xff]  ;;  %v506_v4 = vld [vmem:[#allocation5 + $0x70] sm:$0xff]  ;;  %v287_v10 = vld [vmem:[#allocation5 + $0x28] sm:$0xff]  ;;  %vm291_vm0 = vcmask 31744   ;;  %v1269_v34 = vmov 683565275  }
  0x29   :  { %42 = vperm.xlu0 %1184, %v39_v1   ;;  %v508_v5 = vld [vmem:[#allocation5 + $0x80] sm:$0xff]  ;;  %v542_v6 = vld [vmem:[#allocation5 + $0xb0] sm:$0xff]  ;;  %1076 = vmatprep.mubr.msk.f32.mxu1 %vm291_vm0, %v287_v10  ;;  %v397_v11 = vld [vmem:[#allocation5 + $0x48] sm:$0xff]  ;;  %v1270_v36 = vmov 2475754826   ;;  %vm304_vm11 = vcmask 1043456  }
  0x2a   :  { %v544_v7 = vld [vmem:[#allocation5 + $0xc0] sm:$0xff]  ;;  %v878_v8 = vld [vmem:[#allocation5 + $0x110] sm:$0xff]  ;;  %1084 = vmatprep.mubr.msk.f32.mxu0 %vm291_vm0, %v397_v11  ;;  %v261_v13 = vld [vmem:[#allocation5 + $0x18] sm:$0xff]  ;;  %v1271_v39 = vmov 2131351028   ;;  %s1278_s1 = smov [#allocation7]  }
  0x2b   :  { %v880_v9 = vld [vmem:[#allocation5 + $0x120] sm:$0xff]  ;;  %v260_v12 = vld [vmem:[#allocation5 + $0x10] sm:$0xff]  ;;  %v505_v14 = vld [vmem:[#allocation5 + $0x68] sm:$0xff]  ;;  %v1272_v42 = vmov 2102212464   ;;  %s997_s7 = sshll.u32 %s1278_s1, 4  ;;  %s998_s7 = int_to_ptr.vmem [resolvable:$true] %s997_s7 }
  0x2c   :  { %270 = vperm.xlu1 %1185, %v260_v12   ;;  %v507_v15 = vld [vmem:[#allocation5 + $0x78] sm:$0xff]  ;;  %v541_v16 = vld [vmem:[#allocation5 + $0xa8] sm:$0xff]  ;;  %v910_v21 = vld [vmem:[#allocation5 + $0x130] sm:$0xff]  ;;  %v1273_v45 = vmov 920167782   ;;  %s1236_s8 = scalar_lea.vmem %s998_s7, 128  ;;  %p1241_p3 = scmp.lt.s32.totalorder %s998_s7, %s998_s7 }
  0x2d   :  { %265 = vperm.xlu0 %1184, %v259_v2   ;;  %v543_v17 = vld [vmem:[#allocation5 + $0xb8] sm:$0xff]  ;;  %v877_v18 = vld [vmem:[#allocation5 + $0x108] sm:$0xff]  ;;  %v1274_v48 = vmov 1326507024   ;;  %p1237_p2 = scmp.ne.s32.totalorder %s998_s7, %s1236_s8  ;;  %p1242_p4 = scmp.lt.s32.totalorder %s1236_s8, %s1236_s8 }
  0x2e   :  { %v879_v19 = vld [vmem:[#allocation5 + $0x118] sm:$0xff] }
  0x2f   :  { %v1327_v20 = vld [vmem:[#allocation2] ss:$0 sm:$0xff]  ;;  %p1243_p5 = por %p1242_p4, %p1241_p3 }
  0x30   :  { %275 = vperm.xlu1 %1185, %v261_v13  }
  0x31   :  { %280 = vperm.xlu0 %1184, %v262_v3   ;;  %p1244_p6 = pnand %p1243_p5, %p1237_p2 }
  0x34   :  { %511 = vperm.xlu1 %1185, %v505_v14  }
  0x35   :  { %516 = vperm.xlu0 %1184, %v506_v4  }
  0x38   :  { %521 = vperm.xlu1 %1185, %v507_v15  }
  0x39   :  { %526 = vperm.xlu0 %1184, %v508_v5  }
  0x3c   :  { %547 = vperm.xlu1 %1185, %v541_v16  }
  0x3d   :  { %552 = vperm.xlu0 %1184, %v542_v6  }
  0x40   :  { %557 = vperm.xlu1 %1185, %v543_v17  }
  0x41   :  { %562 = vperm.xlu0 %1184, %v544_v7  }
  0x44   :  { %883 = vperm.xlu1 %1185, %v877_v18  }
  0x45   :  { %888 = vperm.xlu0 %1184, %v878_v8  }
  0x48   :  { %893 = vperm.xlu1 %1185, %v879_v19  }
  0x49   :  { %898 = vperm.xlu0 %1184, %v880_v9  }
  0x4c   :  { %913 = vperm.xlu1 %1185, %v910_v21  }
  0xa8   :  { %v43_v22 = vpop.permute.xlu0 %42 }
  0xa9   :  { %v1330_v23 = vmul.f32 %v1327_v20, %v43_v22 }
  0xab   :  { %v55_v24 = vand.u32 2139095040, %v1330_v23  ;;  %v52_v28 = vand.u32 2147483647, %v1330_v23  ;;  %vm54_vm8 = vcmp.lt.s32.totalorder %v1330_v23, 0 }
  0xad   :  { %v56_v25 = vshrl.u32 %v55_v24, 23  ;;  %v59_v31 = vand.u32 8388607, %v52_v28  ;;  %vm53_vm9 = vcmp.le.f32.partialorder %v52_v28, 0.7853982 }
  0xaf   :  { %v1008_v26 = vadd.s32 4294967169, %v56_v25  ;;  %v60_v50 = vor.u32 8388608, %v59_v31 }
  0xb1   :  { %v62_v27 = vadd.s32 1, %v1008_v26  ;;  %v100_v0 = vshll.u32 %v60_v50, 8 }
  0xb3   :  { %vm63_vm1 = vcmp.gt.s32.totalorder %v62_v27, 0 }
  0xb4   :  { %v64_v29 = vsel %vm63_vm1, %v62_v27, 0 }
  0xb5   :  { %v66_v30 = vand.u32 31, %v64_v29  ;;  %v65_v33 = vshrl.u32 %v64_v29, 5 }
  0xb7   :  { %v67_v32 = vsub.s32 32, %v66_v30  ;;  %v69_v35 = vshll.u32 %v1269_v34, %v66_v30  ;;  %v72_v37 = vshll.u32 %v1270_v36, %v66_v30  ;;  %v75_v41 = vshll.u32 %v1271_v39, %v66_v30 }
  0xb8   :  { %v78_v44 = vshll.u32 %v1272_v42, %v66_v30  ;;  %v81_v47 = vshll.u32 %v1273_v45, %v66_v30  ;;  %vm84_vm2 = vcmp.lt.s32.totalorder %v65_v33, 1  ;;  %vm87_vm3 = vcmp.lt.s32.totalorder %v65_v33, 4 }
  0xb9   :  { %v70_v38 = vshrl.u32 %v1270_v36, %v67_v32  ;;  %v73_v40 = vshrl.u32 %v1271_v39, %v67_v32  ;;  %v76_v43 = vshrl.u32 %v1272_v42, %v67_v32  ;;  %v79_v46 = vshrl.u32 %v1273_v45, %v67_v32 }
  0xba   :  { %v82_v49 = vshrl.u32 %v1274_v48, %v67_v32  ;;  %v68_v59 = vshrl.u32 %v1269_v34, %v67_v32  ;;  %vm86_vm4 = vcmp.lt.s32.totalorder %v65_v33, 3  ;;  %vm85_vm5 = vcmp.lt.s32.totalorder %v65_v33, 2 }
  0xbb   :  { %v71_v51 = vor.u32 %v70_v38, %v69_v35  ;;  %v74_v52 = vor.u32 %v73_v40, %v72_v37  ;;  %v77_v53 = vor.u32 %v76_v43, %v75_v41  ;;  %v80_v54 = vor.u32 %v79_v46, %v78_v44 }
  0xbc   :  { %v83_v55 = vor.u32 %v82_v49, %v81_v47 }
  0xbd   :  { %v89_v56 = vsel %vm87_vm3, %v77_v53, 2102212464  ;;  %v92_v57 = vsel %vm84_vm2, %v71_v51, %v74_v52  ;;  %v96_v58 = vsel %vm84_vm2, %v74_v52, %v77_v53  ;;  %v93_v60 = vsel %vm87_vm3, %v80_v54, 920167782 }
  0xbe   :  { %v97_v61 = vsel %vm87_vm3, %v83_v55, 1326507024  ;;  %v94_v62 = vsel %vm86_vm4, %v77_v53, %v93_v60  ;;  %v88_v1 = vsel %vm84_vm2, %v68_v59, %v71_v51  ;;  %v90_v2 = vsel %vm86_vm4, %v74_v52, %v89_v56  ;;  %v398_v59 = vld [vmem:[#allocation5 + $0x50] sm:$0xff]  ;;  %v289_v60 = vld [vmem:[#allocation5 + $0x38] sm:$0xff] }
  0xbf   :  { %v98_v63 = vsel %vm86_vm4, %v80_v54, %v97_v61  ;;  %v95_v3 = vsel %vm85_vm5, %v92_v57, %v94_v62  ;;  %v91_v9 = vsel %vm85_vm5, %v88_v1, %v90_v2  ;;  %vm144_vm2 = vweird.f32 %v1330_v23  ;;  %v290_v61 = vld [vmem:[#allocation5 + $0x40] sm:$0xff]  ;;  %v669_v1 = vld [vmem:[#allocation5 + $0xd8] sm:$0xff] }
  0xc0   :  { %v99_v4 = vsel %vm85_vm5, %v96_v58, %v98_v63  ;;  %v1339_v7 = vmul.u32.u64.low %v100_v0, %v95_v3  ;;  %v1340_v8 = vmul.u32.u64.high %v100_v0, %v95_v3, %v1339_v7  ;;  %v107_v11 = vmul.u32 %v100_v0, %v91_v9  ;;  %v288_v58 = vld [vmem:[#allocation5 + $0x30] sm:$0xff]  ;;  %v400_v62 = vld [vmem:[#allocation5 + $0x60] sm:$0xff]  ;;  %v667_v63 = vld [vmem:[#allocation5 + $0xc8] sm:$0xff]  ;;  %v271_v9 = vpop.permute.xlu1 %270 }
  0xc1   :  { %v1336_v5 = vmul.u32.u64.low %v100_v0, %v99_v4  ;;  %v1337_v6 = vmul.u32.u64.high %v100_v0, %v99_v4, %v1336_v5  ;;  %v668_v0 = vld [vmem:[#allocation5 + $0xd0] sm:$0xff]  ;;  %v670_v2 = vld [vmem:[#allocation5 + $0xe0] sm:$0xff]  ;;  %v772_v3 = vld [vmem:[#allocation5 + $0xe8] sm:$0xff]  ;;  %vm569_vm3 = vcmask 261120  }
  0xc2   :  { %v110_v10 = vadd.s32 1, %v1340_v8  ;;  %v773_v4 = vld [vmem:[#allocation5 + $0xf0] sm:$0xff]  ;;  %v774_v5 = vld [vmem:[#allocation5 + $0xf8] sm:$0xff] }
  0xc3   :  { %vm109_vm6 = vc.u32 %v1337_v6, %v1339_v7  ;;  %v108_v25 = vadd.s32 %v1339_v7, %v1337_v6  ;;  %v775_v6 = vld [vmem:[#allocation5 + $0x100] sm:$0xff]  ;;  %v537_v7 = vld [vmem:[#allocation5 + $0x88] sm:$0xff] }
  0xc4   :  { %v111_v12 = vsel %vm109_vm6, %v110_v10, %v1340_v8  ;;  %v266_v8 = vpop.permute.xlu0 %265 }
  0xc5   :  { %v112_v13 = vadd.s32 %v111_v12, %v107_v11  ;;  %v284_v11 = vmul.f32 %v1327_v20, %v271_v9  ;;  %v276_v12 = vpop.permute.xlu1 %275 }
  0xc7   :  { %v113_v14 = vadd.s32 536870912, %v112_v13 }
  0xc8   :  { %v281_v10 = vpop.permute.xlu0 %280 }
  0xc9   :  { %v114_v15 = vshrl.u32 %v113_v14, 30 }
  0xcb   :  { %v115_v16 = vshll.u32 %v114_v15, 30  ;;  %v138_v38 = vsub.s32 4, %v114_v15 }
  0xcd   :  { %v116_v17 = vsub.s32 %v112_v13, %v115_v16  ;;  %v139_v41 = vsel %vm54_vm8, %v138_v38, %v114_v15  ;;  %v283_v13 = vmul.f32 %v1327_v20, %v266_v8 }
  0xce   :  { %v141_v43 = vsel %vm53_vm9, 0, %v139_v41 }
  0xcf   :  { %v118_v18 = vsub.s32 0, %v116_v17  ;;  %v145_v44 = vadd.s32 3, %v141_v43  ;;  %v249_v46 = vand.u32 3, %v141_v43 }
  0xd1   :  { %v1009_v19 = vmin.u32 %v118_v18, %v116_v17  ;;  %v146_v45 = vand.u32 3, %v145_v44  ;;  %vm254_vm12 = vcmp.eq.s32.totalorder %v249_v46, 2  ;;  %vm251_vm14 = vcmp.eq.s32.totalorder %v249_v46, 0  ;;  %v517_v18 = vpop.permute.xlu0 %516 }
  0xd2   :  { %vm250_vm1 = vcmp.lt.s32.totalorder %v249_v46, 2 }
  0xd3   :  { %v120_v21 = vclz %v1009_v19  ;;  %vm151_vm10 = vcmp.eq.s32.totalorder %v146_v45, 2  ;;  %vm148_vm13 = vcmp.eq.s32.totalorder %v146_v45, 0  ;;  %vm147_vm15 = vcmp.lt.s32.totalorder %v146_v45, 2 }
  0xd5   :  { %v1010_v22 = vadd.s32 4294967294, %v120_v21 }
  0xd7   :  { %vm1011_vm7 = vcmp.lt.s32.totalorder %v1010_v22, 0 }
  0xd8   :  { %v123_v24 = vsel %vm1011_vm7, 0, %v1010_v22  ;;  %v286_v22 = vmul.f32 %v1327_v20, %v281_v10 }
  0xd9   :  { %v124_v26 = vsub.s32 32, %v123_v24  ;;  %v128_v27 = vsub.s32 4294967266, %v123_v24  ;;  %v125_v29 = vshll.u32 %v116_v17, %v123_v24  ;;  %v512_v24 = vpop.permute.xlu1 %511 }
  0xdb   :  { %v126_v30 = vshrl.u32 %v108_v25, %v124_v26  ;;  %v129_v31 = vadd.s32 127, %v128_v27  ;;  %v285_v26 = vmul.f32 %v1327_v20, %v276_v12 }
  0xdd   :  { %v127_v32 = vor.u32 %v126_v30, %v125_v29  ;;  %v130_v33 = vshll.u32 %v129_v31, 23 }
  0xdf   :  { %v131_v34 = vor.u32 4788187, %v130_v33  ;;  %v134_v36 = vcvt.s32.f32 %v127_v32 }
  0xe1   :  { %v132_v35 = vand.u32 2147483647, %v131_v34 }
  0xe3   :  { %v135_v37 = vmul.f32 %v134_v36, %v132_v35 }
  0xe5   :  { %v136_v39 = vxor.u32 2147483648, %v135_v37 }
  0xe7   :  { %v137_v40 = vsel %vm54_vm8, %v136_v39, %v135_v37  ;;  %v527_v39 = vpop.permute.xlu0 %526 }
  0xe8   :  { %v140_v42 = vsel %vm53_vm9, %v1330_v23, %v137_v40  ;;  %v399_v23 = vld [vmem:[#allocation5 + $0x58] sm:$0xff] }
  0xe9   :  { %1186 = vcosq.f32 %v140_v42 }
  0xea   :  { %1188 = vsinq.f32 %v140_v42  ;;  %v522_v42 = vpop.permute.xlu1 %521 }
  0xf3   :  { %v1187_v47 = vpop.eup %1186 }
  0xf4   :  { %v1189_v48 = vpop.eup %1188  ;;  %v152_v49 = vxor.u32 2147483648, %v1187_v47 }
  0xf5   :  { %v149_v50 = vxor.u32 2147483648, %v1189_v48 }
  0xf6   :  { %v153_v51 = vsel %vm151_vm10, %v152_v49, %v1189_v48  ;;  %v256_v28 = vsel %vm254_vm12, %v152_v49, %v1189_v48  ;;  %v538_v49 = vld [vmem:[#allocation5 + $0x90] sm:$0xff] }
  0xf7   :  { %v150_v52 = vsel %vm148_vm13, %v1187_v47, %v149_v50  ;;  %v253_v53 = vsel %vm251_vm14, %v1187_v47, %v149_v50  ;;  %v539_v50 = vld [vmem:[#allocation5 + $0x98] sm:$0xff] }
  0xf8   :  { %v154_v54 = vsel %vm147_vm15, %v150_v52, %v153_v51  ;;  %v257_v55 = vsel %vm250_vm1, %v253_v53, %v256_v28  ;;  %v540_v51 = vld [vmem:[#allocation5 + $0xa0] sm:$0xff] }
  0xf9   :  { %v155_v56 = vsel %vm144_vm2, nan, %v154_v54  ;;  %v258_v57 = vsel %vm144_vm2, nan, %v257_v55  ;;  %v1275_v55 = vmov 0.0|0.0  }
  0xfa   :  { %1074 = vmatprep.subr.msk.mxu1 %vm304_vm11, %v155_v56  ;;  %1082 = vmatprep.subr.msk.mxu0 %vm304_vm11, %v258_v57 }
  0xfb   :  { %1075 = vmatpush3.msk.msra.mxu1 %vm304_vm11, %v155_v56  ;;  %1083 = vmatpush3.msk.msra.mxu0 %vm304_vm11, %v258_v57 }
  0xfc   :  { %1077 = vmatmul.mubr.msk.f32.vlgmr.msra.gmra.mrb[0].mxu1 %vm291_vm0, %v288_v58  ;;  %1104 = vmatprep.subr.msk.mxu1 %vm304_vm11, %v155_v56  ;;  %v548_v58 = vpop.permute.xlu1 %547 }
  0xfd   :  { %1085 = vmatmul.mubr.msk.f32.vlgmr.msra.gmra.mrb[0].mxu0 %vm291_vm0, %v398_v59  ;;  %1105 = vmatpush3.msk.msra.mxu1 %vm304_vm11, %v155_v56  ;;  %v1277_v56 = vmov 0.0  }
  0xfe   :  { %1112 = vmatprep.subr.msk.mxu1 %vm304_vm11, %v258_v57  ;;  %1079 = vmatprep.mubr.msk.f32.mxu1 %vm291_vm0, %v289_v60 }
  0xff   :  { %1087 = vmatprep.mubr.msk.f32.mxu0 %vm291_vm0, %v399_v23 }
 0x100   :  { %1080 = vmatmul.mubr.msk.f32.gmra.mrb[2].mxu1 %vm291_vm0, %v290_v61  ;;  %v558_v60 = vpop.permute.xlu1 %557  ;;  %v565_v61 = vmul.f32 %v1327_v20, %v548_v58 }
 0x101   :  { %1088 = vmatmul.mubr.msk.f32.gmra.mrb[2].mxu0 %vm291_vm0, %v400_v62  ;;  %1106 = vmatprep.mubr.msk.f32.mxu1 %vm291_vm0, %v667_v63 }
 0x102   :  { %1098 = vmatprep.mubr.msk.f32.mxu0 %vm569_vm3, %v537_v7 }
 0x104   :  { %1107 = vmatmul.mubr.msk.f32.vlgmr.msra.gmra.mrb[4].mxu1 %vm291_vm0, %v668_v0 }
 0x105   :  { %1113 = vmatpush3.msk.msra.mxu1 %vm304_vm11, %v258_v57  ;;  %1109 = vmatprep.mubr.msk.f32.mxu1 %vm291_vm0, %v669_v1  ;;  %v553_v57 = vpop.permute.xlu0 %552 }
 0x106   :  { %v566_v23 = vmul.f32 %v1327_v20, %v553_v57 }
 0x108   :  { %1110 = vmatmul.mubr.msk.f32.gmra.mrb[6].mxu1 %vm291_vm0, %v670_v2 }
 0x109   :  { %1114 = vmatprep.mubr.msk.f32.mxu1 %vm291_vm0, %v772_v3  ;;  %v563_v59 = vpop.permute.xlu0 %562 }
 0x10a   :  { %v568_v3 = vmul.f32 %v1327_v20, %v563_v59 }
 0x10c   :  { %1115 = vmatmul.mubr.msk.f32.vlgmr.msra.gmra.mrb[4].mxu1 %vm291_vm0, %v773_v4  ;;  %v884_v4 = vpop.permute.xlu1 %883 }
 0x10d   :  { %1117 = vmatprep.mubr.msk.f32.mxu1 %vm291_vm0, %v774_v5  ;;  %v889_v1 = vpop.permute.xlu0 %888 }
 0x110   :  { %1118 = vmatmul.mubr.msk.f32.gmra.mrb[6].mxu1 %vm291_vm0, %v775_v6  ;;  %vm1276_vm0 = vmmov 0   ;;  %v567_v6 = vmul.f32 %v1327_v20, %v558_v60 }
 0x1cf   :  { %v1078_v14 = vpop.f32.mrb[0].mxu1 }
 0x1d0   :  { %v394_v15 = vadd.f32 %v1078_v14, %v284_v11  ;;  %v374_v16 = vpop.f32.mrb[1].mxu1  ;;  %v1086_v17 = vpop.f32.mrb[0].mxu0 }
 0x1d1   :  { %v393_v19 = vadd.f32 %v374_v16, %v283_v13  ;;  %v482_v21 = vpop.f32.mrb[1].mxu0  ;;  %v899_v16 = vpop.permute.xlu0 %898 }
 0x1d2   :  { %v502_v25 = vadd.f32 %v1086_v17, %v394_v15 }
 0x1d3   :  { %v501_v27 = vadd.f32 %v482_v21, %v393_v19  ;;  %v1081_v29 = vpop.f32.mrb[2].mxu1  ;;  %v894_v19 = vpop.permute.xlu1 %893 }
 0x1d4   :  { %v530_v30 = vadd.f32 %v517_v18, %v502_v25  ;;  %v396_v31 = vadd.f32 %v1081_v29, %v286_v22  ;;  %v384_v32 = vpop.f32.mrb[3].mxu1  ;;  %v1089_v33 = vpop.f32.mrb[2].mxu0 }
 0x1d5   :  { %v529_v34 = vadd.f32 %v512_v24, %v501_v27  ;;  %v395_v35 = vadd.f32 %v384_v32, %v285_v26  ;;  %v492_v36 = vpop.f32.mrb[3].mxu0  ;;  %v909_v27 = vld [vmem:[#allocation5 + $0x128] sm:$0xff] }
 0x1d6   :  { %v534_v37 = vmax.f32 %v530_v30, 0.0  ;;  %v504_v38 = vadd.f32 %v1089_v33, %v396_v31 }
 0x1d7   :  { %v533_v40 = vmax.f32 %v529_v34, 0.0  ;;  %v503_v41 = vadd.f32 %v492_v36, %v395_v35  ;;  %v914_v29 = vpop.permute.xlu1 %913 }
 0x1d8   :  { %v532_v43 = vadd.f32 %v527_v39, %v504_v38 }
 0x1d9   :  { %v531_v44 = vadd.f32 %v522_v42, %v503_v41  ;;  %v1131_v45 = vpack.c.bf16 %v534_v37, %v533_v40 }
 0x1da   :  { %v536_v46 = vmax.f32 %v532_v43, 0.0 }
 0x1db   :  { %v535_v47 = vmax.f32 %v531_v44, 0.0  ;;  %1132 = vmatprep.subr.bf16.mxu0 %v1131_v45 }
 0x1dc   :  { %1134 = vmatpush3.bf16.msra.mxu0 %v1131_v45 }
 0x1dd   :  { %v1135_v48 = vpack.c.bf16 %v536_v46, %v535_v47 }
 0x1df   :  { %1136 = vmatprep.subr.bf16.mxu0 %v1135_v48  ;;  %v1116_v28 = vpop.f32.mrb[4].mxu1 }
 0x1e0   :  { %1138 = vmatpush3.bf16.msra.mxu0 %v1135_v48  ;;  %v854_v52 = vpop.f32.mrb[5].mxu1 }
 0x1e1   :  { %1139 = vmatprep.subr.bf16.mxu0 %v1275_v55 }
 0x1e3   :  { %1099 = vmatmul.mubr.msk.f32.vlgmr.msra.gmra.mrb[4].mxu0 %vm569_vm3, %v538_v49  ;;  %v1119_v53 = vpop.f32.mrb[6].mxu1 }
 0x1e4   :  { %1101 = vmatprep.mubr.msk.f32.mxu0 %vm569_vm3, %v539_v50  ;;  %v864_v54 = vpop.f32.mrb[7].mxu1 }
 0x1e7   :  { %1102 = vmatmul.mubr.msk.f32.gmra.mrb[6].mxu0 %vm569_vm3, %v540_v51 }
 0x1e8   :  { %1128 = vmatprep.mubr.msk.f32.mxu0 %vm1276_vm0, %v1277_v56 }
 0x2b6   :  { %v1100_v62 = vpop.f32.mrb[4].mxu0 }
 0x2b7   :  { %v654_v63 = vadd.f32 %v1100_v62, %v566_v23  ;;  %v648_v0 = vpop.f32.mrb[5].mxu0 }
 0x2b8   :  { %v649_v2 = vadd.f32 %v648_v0, %v565_v61 }
 0x2b9   :  { %v1154_v5 = vadd.f32 %v1116_v28, %v654_v63 }
 0x2ba   :  { %v1156_v7 = vadd.f32 %v854_v52, %v649_v2  ;;  %v1103_v8 = vpop.f32.mrb[6].mxu0 }
 0x2bb   :  { %v902_v9 = vadd.f32 %v1154_v5, %v889_v1  ;;  %v664_v10 = vadd.f32 %v1103_v8, %v568_v3  ;;  %v658_v11 = vpop.f32.mrb[7].mxu0 }
 0x2bc   :  { %v901_v12 = vadd.f32 %v1156_v7, %v884_v4  ;;  %v659_v13 = vadd.f32 %v658_v11, %v567_v6 }
 0x2bd   :  { %v906_v14 = vmax.f32 %v902_v9, 0.0  ;;  %v1158_v15 = vadd.f32 %v1119_v53, %v664_v10 }
 0x2be   :  { %v905_v17 = vmax.f32 %v901_v12, 0.0  ;;  %v1160_v18 = vadd.f32 %v864_v54, %v659_v13 }
 0x2bf   :  { %v904_v21 = vadd.f32 %v1158_v15, %v899_v16 }
 0x2c0   :  { %v1140_v22 = vpack.c.bf16 %v906_v14, %v905_v17  ;;  %v903_v24 = vadd.f32 %v1160_v18, %v894_v19 }
 0x2c1   :  { %v908_v25 = vmax.f32 %v904_v21, 0.0 }
 0x2c2   :  { %v907_v26 = vmax.f32 %v903_v24, 0.0  ;;  %1141 = vmatpush3.bf16.msra.mxu0 %v1140_v22 }
 0x2c3   :  { %1142 = vmatprep.subr.bf16.mxu0 %v1275_v55 }
 0x2c4   :  { %v1143_v20 = vpack.c.bf16 %v908_v25, %v907_v26 }
 0x2c6   :  { %1144 = vmatpush3.bf16.msra.mxu0 %v1143_v20 }
 0x2c9   :  { %1129 = vmatmul.mubr.msk.f32.vlgmr.msra.gmra.mrb[8].mxu0 %vm569_vm3, %v909_v27 }
 0x39c   :  { %v985_v30 = vpop.f32.mrb[8].mxu0 }
 0x39d   :  { %v986_v31 = vadd.f32 %v985_v30, %v914_v29  ;;  %v1130_v32 = vpop.f32.mrb[9].mxu0 }
 0x39f   :  { %1190 = vtanh.f32 %v986_v31 }
 0x3a9   :  { %v1191_v33 = vpop.eup %1190 }
 0x3aa   :  { %990 = vst [vmem:[#allocation7] sm:$0xff] %v1191_v33 }
 0x3ab   :  { %1247 = shalt.err (!%p1244_p6)
}
 0x3ac   :  { %s1248_s11 = scalar_lea.hbm %s1400_s2, 128 }
 0x3ad   :  { %p1249_p7 = scmp.ne.s32.totalorder %s1400_s2, %s1248_s11  ;;  %p1252_p8 = scmp.lt.u32.totalorder %s1248_s11, %s1400_s2 }
 0x3af   :  { %p1254_p9 = pnand %p1252_p8, %p1249_p7 }
 0x3b1   :  { %1257 = shalt.err (!%p1254_p9)
}
 0x3b2   :  { %1000 = dma.vmem_to_hbm [thread:$0]  %s998_s7, 128, %s1400_s2, [#allocation4]  }
 0x3b3   :  { %1262 = dma.done.wait [#allocation4], 128  }
 0x3b4   :  { %1263 = vsyncadd [#allocation4], 4294967168 }
 0x3b5   :  { %1004 = vsyncpa [#allocation3], 1 }
 0x3b6   :  { %1005 = vsyncpa [#allocation6], 1 }
 0x3b7   :  { %1006 = vsyncpa [#allocation4], 1 }

</bundles_post_ra>
